<compile_context>
chip_gen: v5e
topology: v5e:2x2
jax: 0.10.0
libtpu: 0.0.40
codegen_flags: <defaults>
</compile_context>

<pallas_src>
import jax
import jax.numpy as jnp
from jax.experimental import pallas as pl
from jax.experimental.pallas import tpu as pltpu

_LANE = 128      # lane width (last-dim vreg width)
_SUBLANE = 8     # sublane width (second-to-last dim multiple)


def _round_up(x, m):
    return ((x + m - 1) // m) * m


def highway_kernel(x_ref, w_ref, b_ref, o_ref):
    """x_ref: (TM, E) f32, w_ref: (E, 2*E_pad) bf16, b_ref: (1, 2*E_pad) f32."""
    e = x_ref.shape[-1]                 # true feature dim (unpadded)
    e_pad = w_ref.shape[-1] // 2        # lane-padded width of each output half

    x = x_ref[...]                      # f32, reused for the residual term
    # Single fused MXU matmul for both branches: y = x @ [Wp | Wg] + [bp | bg]
    y = jnp.dot(x.astype(w_ref.dtype), w_ref[...],
                preferred_element_type=jnp.float32) + b_ref[...]

    proj = jnp.maximum(y[:, :e], 0.0)                 # relu(x @ Wp + bp)
    gate = jax.nn.sigmoid(y[:, e_pad:e_pad + e])      # sigmoid(x @ Wg + (bg - inf))

    # Elementwise combine in f32 (exact residual; v5e has no bf16 VPU anyway).
    o_ref[...] = (proj * gate + (1.0 - gate) * x).astype(o_ref.dtype)


def prepare_highway_params(w_proj, b_proj, w_gate, b_gate,
                           compute_dtype=jnp.bfloat16):
    """ONE-TIME prep (not per forward): fuse, transpose to (in, out), pad OUTPUT
    columns to a lane multiple, cast weights to bf16 for the MXU.

    w_*: (E, E) in PyTorch (out, in) layout.  b_*: (E,).
    Returns (w_fused (E, 2*E_pad) bf16, b_fused (1, 2*E_pad) f32).
    """
    E = w_proj.shape[0]
    e_pad = _round_up(E, _LANE)

    def pad_w(w):   # (out, in) -> (in, out_pad); contracting dim left UNpadded
        return jnp.pad(w.T, ((0, 0), (0, e_pad - E)))

    def pad_b(b):
        return jnp.pad(b, (0, e_pad - E))

    w_fused = jnp.concatenate([pad_w(w_proj), pad_w(w_gate)], axis=1)
    w_fused = w_fused.astype(compute_dtype)                        # (E, 2*E_pad)
    b_fused = jnp.concatenate([pad_b(b_proj), pad_b(b_gate)], axis=0)
    b_fused = b_fused.reshape(1, 2 * e_pad).astype(jnp.float32)    # keep -inf in f32
    return w_fused, b_fused


def _choose_tm(batch, block_m):
    """Balanced batch tiling: padded tail < 1 tile; >=2 grid steps when there are
    enough rows so v7x megacore can shard the 'parallel' batch axis."""
    n_steps = max(1, pl.cdiv(batch, block_m))
    if batch >= 2 * _SUBLANE:
        n_steps = max(n_steps, 2)
    tm = _round_up(pl.cdiv(batch, n_steps), _SUBLANE)
    return min(tm, block_m)


def highway_shut(x, w_fused, b_fused, *, block_m=1024):
    """x: (B, E) float32.  w_fused/b_fused from prepare_highway_params."""
    B, E = x.shape
    assert w_fused.shape[0] == E
    n = w_fused.shape[1]                      # 2 * E_pad

    tm = _choose_tm(B, block_m)
    grid = (pl.cdiv(B, tm),)                  # partial last block is masked by Pallas

    cost = pl.CostEstimate(
        flops=2 * B * E * n,
        transcendentals=B * E,
        bytes_accessed=(x.size * x.dtype.itemsize
                        + w_fused.size * w_fused.dtype.itemsize
                        + b_fused.size * b_fused.dtype.itemsize
                        + B * E * x.dtype.itemsize),
    )

    return pl.pallas_call(
        highway_kernel,
        out_shape=jax.ShapeDtypeStruct((B, E), x.dtype),
        grid_spec=pltpu.PrefetchScalarGridSpec(
            num_scalar_prefetch=0,
            grid=grid,
            in_specs=[
                pl.BlockSpec((tm, E), lambda i: (i, 0)),   # x tile (pipelined, unpadded)
                pl.BlockSpec((E, n), lambda i: (0, 0)),    # fused weights (VMEM-resident)
                pl.BlockSpec((1, n), lambda i: (0, 0)),    # fused biases (VMEM-resident)
            ],
            out_specs=pl.BlockSpec((tm, E), lambda i: (i, 0)),
        ),
        compiler_params=pltpu.CompilerParams(
            dimension_semantics=("parallel",),   # megacore shards the batch axis
        ),
        cost_estimate=cost,
    )(x, w_fused, b_fused)


def highway_shut_ref(x, w_proj, b_proj, w_gate, b_gate):
    """Plain-JAX reference mirroring the PyTorch forward."""
    x_proj = jax.nn.relu(x @ w_proj.T + b_proj)
    x_gate = jax.nn.sigmoid(x @ w_gate.T + b_gate)
    return x_proj * x_gate + (1.0 - x_gate) * x


if __name__ == "__main__":
    key = jax.random.PRNGKey(0)
    batch_size = 8
    embed_dim = 32

    k_x, k_wp, k_bp, k_wg, k_bg = jax.random.split(key, 5)

    # Input: (batch_size, char_embedding_dim) after conv + maxpool (per the docstring).
    x = jax.random.normal(k_x, (batch_size, embed_dim), dtype=jnp.float32)

    # PyTorch Linear shapes: weight (out, in), bias (out,).
    bound = 1.0 / (embed_dim ** 0.5)
    w_proj = jax.random.uniform(k_wp, (embed_dim, embed_dim), jnp.float32, -bound, bound)
    b_proj = jax.random.uniform(k_bp, (embed_dim,), jnp.float32, -bound, bound)
    w_gate = jax.random.uniform(k_wg, (embed_dim, embed_dim), jnp.float32, -bound, bound)
    b_gate_raw = jax.random.uniform(k_bg, (embed_dim,), jnp.float32, -bound, bound)
    # Module __init__ adds -inf to the gate bias -> gate is identically 0.
    b_gate = b_gate_raw + jnp.float32(-jnp.inf)

    # One-time weight prep (fuse + transpose + pad output columns + bf16 cast).
    w_fused, b_fused = prepare_highway_params(w_proj, b_proj, w_gate, b_gate)
    out = jax.block_until_ready(highway_shut(x, w_fused, b_fused))

    ref = highway_shut_ref(x, w_proj, b_proj, w_gate, b_gate)
    assert out.shape == (batch_size, embed_dim)
    # With the -inf gate bias, gate == 0 exactly, so out == x exactly (tight tol ok).
    assert jnp.allclose(out, ref, atol=1e-5, rtol=1e-5), "mismatch vs reference (shut gate)"

    # Extra validation of the matmul/proj path with an OPEN gate (bf16 MXU -> looser tol),
    # so the kernel is not only checked in the degenerate out == x case.
    w_fused2, b_fused2 = prepare_highway_params(w_proj, b_proj, w_gate, b_gate_raw)
    out2 = jax.block_until_ready(highway_shut(x, w_fused2, b_fused2))
    ref2 = highway_shut_ref(x, w_proj, b_proj, w_gate, b_gate_raw)
    assert jnp.allclose(out2, ref2, atol=3e-2, rtol=3e-2), "mismatch vs reference (open gate)"

    print("KERNEL_OK")
</pallas_src>

<mosaic_0001>
module attributes {stable_mosaic.version = 11 : i64} {
  func.func @highway_kernel(%arg0: i32, %arg1: memref<8x32xf32, #tpu.memory_space<vmem>>, %arg2: memref<32x256xbf16, #tpu.memory_space<vmem>>, %arg3: memref<1x256xf32, #tpu.memory_space<vmem>>, %arg4: memref<8x32xf32, #tpu.memory_space<vmem>>) attributes {dimension_semantics = [#tpu.dimension_semantics<parallel>], iteration_bounds = array<i64: 1>, scalar_prefetch = 0 : i64, scratch_operands = 0 : i64, tpu.core_type = #tpu.core_type<tc>, window_params = [{transform_indices = @transform_0, window_bounds = array<i64: 8, 32>}, {pipeline_mode = #tpu.pipeline_mode<synchronous>, transform_indices = @transform_1, window_bounds = array<i64: 32, 256>}, {pipeline_mode = #tpu.pipeline_mode<synchronous>, transform_indices = @transform_2, window_bounds = array<i64: 1, 256>}, {transform_indices = @transform_3, window_bounds = array<i64: 8, 32>}]} {
    %c0 = arith.constant 0 : index
    %c0_0 = arith.constant 0 : index
    %0 = vector.load %arg1[%c0, %c0_0] : memref<8x32xf32, #tpu.memory_space<vmem>>, vector<8x32xf32>
    %1 = arith.truncf %0 : vector<8x32xf32> to vector<8x32xbf16>
    %c0_1 = arith.constant 0 : index
    %c0_2 = arith.constant 0 : index
    %2 = vector.load %arg2[%c0_1, %c0_2] : memref<32x256xbf16, #tpu.memory_space<vmem>>, vector<32x256xbf16>
    %cst = arith.constant dense<0.000000e+00> : vector<8x256xf32>
    %3 = tpu.matmul %1, %2, %cst {dimension_numbers = #tpu.dot_dimension_numbers<[1], [0], [0], [1], [0, 0, 1, 1], [], []>} : vector<8x32xbf16>, vector<32x256xbf16>, vector<8x256xf32> -> vector<8x256xf32>
    %c0_3 = arith.constant 0 : index
    %c0_4 = arith.constant 0 : index
    %4 = vector.load %arg3[%c0_3, %c0_4] : memref<1x256xf32, #tpu.memory_space<vmem>>, vector<1x256xf32>
    %5 = vector.broadcast %4 : vector<1x256xf32> to vector<8x256xf32>
    %6 = arith.addf %3, %5 : vector<8x256xf32>
    %7 = vector.extract_strided_slice %6 {offsets = [0, 0], sizes = [8, 32], strides = [1, 1]} : vector<8x256xf32> to vector<8x32xf32>
    %cst_5 = arith.constant 0.000000e+00 : f32
    %8 = vector.broadcast %cst_5 : f32 to vector<8x32xf32>
    %9 = arith.maximumf %7, %8 : vector<8x32xf32>
    %10 = vector.extract_strided_slice %6 {offsets = [0, 128], sizes = [8, 32], strides = [1, 1]} : vector<8x256xf32> to vector<8x32xf32>
    %11 = arith.negf %10 : vector<8x32xf32>
    %12 = math.exp %11 : vector<8x32xf32>
    %cst_6 = arith.constant 1.000000e+00 : f32
    %13 = vector.broadcast %cst_6 : f32 to vector<8x32xf32>
    %14 = arith.addf %13, %12 : vector<8x32xf32>
    %15 = arith.divf %13, %14 : vector<8x32xf32>
    %16 = arith.mulf %9, %15 : vector<8x32xf32>
    %cst_7 = arith.constant 1.000000e+00 : f32
    %17 = vector.broadcast %cst_7 : f32 to vector<8x32xf32>
    %18 = arith.subf %17, %15 : vector<8x32xf32>
    %19 = arith.mulf %18, %0 : vector<8x32xf32>
    %20 = arith.addf %16, %19 : vector<8x32xf32>
    %c0_8 = arith.constant 0 : index
    %c0_9 = arith.constant 0 : index
    %21 = vector.load %arg4[%c0_8, %c0_9] : memref<8x32xf32, #tpu.memory_space<vmem>>, vector<8x32xf32>
    tpu.vector_store %arg4[%c0_8, %c0_9], %20 {strides = array<i32>} : memref<8x32xf32, #tpu.memory_space<vmem>>, vector<8x32xf32>,
    return
  }
  func.func @transform_0(%arg0: i32) -> (i32, i32) {
    %c0_i32 = arith.constant 0 : i32
    %c0_i32_0 = arith.constant 0 : i32
    return %arg0, %c0_i32 : i32, i32
  }
  func.func @transform_1(%arg0: i32) -> (i32, i32) {
    %c0_i32 = arith.constant 0 : i32
    %c0_i32_0 = arith.constant 0 : i32
    %c0_i32_1 = arith.constant 0 : i32
    return %c0_i32, %c0_i32_0 : i32, i32
  }
  func.func @transform_2(%arg0: i32) -> (i32, i32) {
    %c0_i32 = arith.constant 0 : i32
    %c0_i32_0 = arith.constant 0 : i32
    %c0_i32_1 = arith.constant 0 : i32
    return %c0_i32, %c0_i32_0 : i32, i32
  }
  func.func @transform_3(%arg0: i32) -> (i32, i32) {
    %c0_i32 = arith.constant 0 : i32
    %c0_i32_0 = arith.constant 0 : i32
    return %arg0, %c0_i32 : i32, i32
  }
}

</mosaic_0001>

<bundles_post_ra>
// kernel: tpu_custom_call.1
= control target key start
LH: loop header
LB: loop body
LE: loop exit
PB: predicated region body
PF: predicated region fallthrough
CT: control target
= control target key end

     0   :  { %8 = vsyncpa [#allocation3], 0  ;;  %s340_s0 = inlined_call_operand.hbm [shape: f32[8,32], index: 0, kind: input, shape index: {}]   ;;  %s341_s1 = inlined_call_operand.hbm [shape: bf16[32,256], index: 1, kind: input, shape index: {}]   ;;  %s342_s2 = inlined_call_operand.hbm [shape: f32[1,256], index: 2, kind: input, shape index: {}]   ;;  %s343_s3 = inlined_call_operand.hbm [shape: f32[8,32], index: 3, kind: output, shape index: {}]  }
   0x1   :  { %9 = vsyncpa [#allocation6], 0  ;;  %s26_s14 = sshll.u32 %s341_s1, 4  ;;  %s27_s14 = int_to_ptr.hbm [resolvable:$true] %s26_s14 }
   0x2   :  { %10 = vsyncpa [#allocation4], 0  ;;  %s299_s15 = smov [#allocation5]   ;;  %s16_s19 = sshll.u32 %s340_s0, 4  ;;  %s17_s19 = int_to_ptr.hbm [resolvable:$true] %s16_s19 }
   0x3   :  { %s28_s16 = sshll.u32 %s299_s15, 4  ;;  %s300_s20 = smov 128   ;;  %s29_s16 = int_to_ptr.vmem [resolvable:$true] %s28_s16 }
   0x4   :  { %s301_s21 = smov 8   ;;  %s302_s22 = smov [#allocation2]  }
   0x5   :  { %34 = dma.hbm_to_vmem [thread:$0]  %s27_s14, 512, %s29_s16, [#allocation6], %s300_s20, %s300_s20, %s301_s21  }
   0x6   :  { %s18_s23 = sshll.u32 %s302_s22, 4  ;;  %s40_s26 = sshll.u32 %s342_s2, 4  ;;  %s19_s23 = int_to_ptr.vmem [resolvable:$true] %s18_s23  ;;  %s41_s26 = int_to_ptr.hbm [resolvable:$true] %s40_s26 }
   0x7   :  { %21 = dma.hbm_to_vmem [thread:$0]  %s17_s19, 128, %s19_s23, [#allocation3]  }
   0x8   :  { %s303_s1 = smov [#allocation7]  }
   0x9   :  { %s42_s27 = sshll.u32 %s303_s1, 4  ;;  %s43_s27 = int_to_ptr.vmem [resolvable:$true] %s42_s27 }
   0xa   :  { %45 = dma.hbm_to_vmem [thread:$0]  %s41_s26, 32, %s43_s27, [#allocation6]  }
   0xb   :  { %293 = dma.done.wait [#allocation3], 128  }
   0xc   :  { %294 = vsyncadd [#allocation3], 4294967168 }
   0xd   :  { %295 = dma.done.wait [#allocation6], 544  }
   0xe   :  { %296 = vsyncadd [#allocation6], 4294966752  ;;  %v185_v0 = vld [vmem:[#allocation5 + $0x14] sm:$0xf]  ;;  %v176_v1 = vld [vmem:[#allocation5 + $0x18] sm:$0xf0] }
   0xf   :  { %v183_v2 = vld [vmem:[#allocation5 + $0x4] sm:$0xf]  ;;  %v179_v3 = vor.u32 %v185_v0, %v176_v1  ;;  %v168_v4 = vld [vmem:[#allocation5 + $0x8] sm:$0xf0]  ;;  %v174_v5 = vld [vmem:[#allocation5 + $0x10] sm:$0xf] }
  0x10   :  { %v186_v6 = vld [vmem:[#allocation5 + $0x14] sm:$0xf0]  ;;  %v166_v7 = vld [vmem:[#allocation5] sm:$0xf]  ;;  %v184_v8 = vld [vmem:[#allocation5 + $0x4] sm:$0xf0]  ;;  %v171_v9 = vor.u32 %v183_v2, %v168_v4 }
  0x11   :  { %114 = vmatpush.bf16.msra.mxu1 %v179_v3  ;;  %v59_v10 = vld [vmem:[#allocation2] sm:$0xff]  ;;  %v175_v11 = vor.u32 %v186_v6, %v174_v5  ;;  %v167_v12 = vor.u32 %v184_v8, %v166_v7  ;;  %vm91_vm0 = vcmask 261120   ;;  %v65_v14 = vld [vmem:[#allocation7] sm:$0x3]  ;;  %s304_s0 = smov [#allocation8]   ;;  %s153_s30 = sshll.u32 %s343_s3, 4  ;;  %s154_s30 = int_to_ptr.hbm [resolvable:$true] %s153_s30 }
  0x12   :  { %v60_v13 = vpack.c.bf16 %v59_v10, %v59_v10  ;;  %v68_v15 = vperm.slane %v65_v14, 1  ;;  %v67_v25 = vperm.slane %v65_v14, 0  ;;  %s151_s2 = sshll.u32 %s304_s0, 4  ;;  %s152_s2 = int_to_ptr.vmem [resolvable:$true] %s151_s2 }
  0x13   :  { %101 = vmatpush.bf16.msra.mxu0 %v175_v11 }
  0x15   :  { %115 = vmatpush.bf16.msra.mxu1 %v171_v9 }
  0x17   :  { %102 = vmatpush.bf16.msra.mxu0 %v167_v12 }
  0x18   :  { %181 = vmatmul.msk.bf16.vlgmr.msra.gmra.mxu1 %vm91_vm0, %v60_v13 }
  0x1a   :  { %180 = vmatmul.msk.bf16.vlgmr.msra.gmra.mxu0 %vm91_vm0, %v60_v13 }
  0x95   :  { %v117_v16 = vpop.f32.mrf.mxu1 }
  0x96   :  { %v118_v17 = vadd.f32 %v117_v16, %v68_v15 }
  0x97   :  { %v104_v18 = vpop.f32.mrf.mxu0 }
  0x98   :  { %v182_v19 = vmul.f32 -1.442695, %v118_v17  ;;  %v105_v29 = vadd.f32 %v104_v18, %v67_v25 }
  0x9a   :  { %193 = vpow2.f32 %v182_v19  ;;  %v121_v34 = vmax.f32 %v105_v29, 0.0 }
  0x9d   :  { %v119_v20 = vpop.f32.mrf.mxu1 }
  0x9f   :  { %v106_v21 = vpop.f32.mrf.mxu0 }
  0xa0   :  { %v194_v22 = vpop.eup %193 }
  0xa1   :  { %v125_v23 = vadd.f32 1.0, %v194_v22 }
  0xa3   :  { %195 = vrcp.f32 %v125_v23  ;;  %v137_v28 = vand.u32 2147483648, %v125_v23  ;;  %v135_v31 = vand.u32 2147483647, %v125_v23  ;;  %vm131_vm2 = vweird.f32 %v125_v23 }
  0xa5   :  { %v138_v33 = vor.u32 1.1754944e-38, %v137_v28  ;;  %vm136_vm4 = vcmp.eq.f32.partialorder %v135_v31, 8.507059e+37 }
  0xa9   :  { %v196_v24 = vpop.eup %195 }
  0xaa   :  { %v127_v26 = vmul.f32 %v196_v24, %v125_v23  ;;  %vm132_vm1 = vweird.f32 %v196_v24 }
  0xab   :  { %vm133_vm3 = vmor %vm131_vm2, %vm132_vm1 }
  0xac   :  { %v128_v27 = vsub.f32 1.0, %v127_v26 }
  0xae   :  { %v129_v30 = vmul.f32 %v196_v24, %v128_v27 }
  0xb0   :  { %v130_v32 = vadd.f32 %v196_v24, %v129_v30 }
  0xb2   :  { %v134_v35 = vsel %vm133_vm3, %v196_v24, %v130_v32 }
  0xb3   :  { %v139_v36 = vsel %vm136_vm4, %v138_v33, %v134_v35 }
  0xb4   :  { %v142_v37 = vsub.f32 1.0, %v139_v36  ;;  %v141_v38 = vmul.f32 %v139_v36, %v121_v34 }
  0xb6   :  { %v143_v39 = vmul.f32 %v142_v37, %v59_v10 }
  0xb8   :  { %v144_v40 = vadd.f32 %v143_v39, %v141_v38 }
  0xba   :  { %145 = vst.msk [vmem:[#allocation8] sm:$0xff] %vm91_vm0, %v144_v40 }
  0xbb   :  { %156 = dma.vmem_to_hbm [thread:$0]  %s152_s2, 128, %s154_s30, [#allocation4]  }
  0xbc   :  { %297 = dma.done.wait [#allocation4], 128  }
  0xbd   :  { %298 = vsyncadd [#allocation4], 4294967168 }
  0xbe   :  { %161 = vsyncpa [#allocation3], 1 }
  0xbf   :  { %162 = vsyncpa [#allocation6], 1 }
  0xc0   :  { %163 = vsyncpa [#allocation4], 1 }

</bundles_post_ra>
